<compile_context>
chip_gen: v7x
topology: tpu7x:2x2x1
jax: 0.10.0
libtpu: 0.0.40
codegen_flags: <defaults>
</compile_context>

<pallas_src>
import math

import jax
import jax.numpy as jnp
import numpy as np
from jax.experimental import pallas as pl
from jax.experimental.pallas import tpu as pltpu

_HALF_LOG_2PI = 0.5 * math.log(2.0 * math.pi)
_LANES = 128

# Default tile rows per path (rows of 128 lanes). Full path has 9 refs
# (3 in + 6 out), only_loss has 4; both stay well under v5e's 16 MiB scoped
# VMEM when double-buffered.
_DEFAULT_TILE_ROWS_FULL = 1024     # 9 * 2 * 1024 * 128 * 4 B ~= 9.4 MiB
_DEFAULT_TILE_ROWS_LOSS = 2048     # 4 * 2 * 2048 * 128 * 4 B ~= 8.4 MiB
_VMEM_TILE_BUDGET = 12 * 1024 * 1024   # keep under v5e's 16 MiB scoped default


def _uncertainty_full_kernel(m_ref, a_ref, y_ref,
                             loss_ref, dm_ref, da_ref,
                             hmm_ref, hma_ref, haa_ref):
    # Native-dtype inputs, f32 math (VPU casts are free; v5e has no bf16 VPU).
    m = m_ref[...].astype(jnp.float32)
    a = a_ref[...].astype(jnp.float32)
    y = y_ref[...].astype(jnp.float32)

    # Stable softplus(a) and sigmoid(a) sharing a single EUP exp.
    e = jnp.exp(-jnp.abs(a))
    s = jnp.maximum(a, 0.0) + jnp.log1p(e)          # softplus(a) > 0
    t = 1.0 / (1.0 + e)
    sig = jnp.where(a >= 0.0, t, e * t)              # sigmoid(a)

    r = y - m
    r2 = r * r
    inv_s = 1.0 / s                                  # exact (not approx): feeds s^-3, s^-4
    inv_s2 = inv_s * inv_s
    inv_s3 = inv_s2 * inv_s
    inv_s4 = inv_s2 * inv_s2

    # loss = -Normal(m, s).log_prob(y)
    loss_ref[...] = 0.5 * r2 * inv_s2 + jnp.log(s) + _HALF_LOG_2PI

    # first derivatives
    dm_ref[...] = -r * inv_s2                        # dL/dm
    dL_ds = inv_s - r2 * inv_s3                      # dL/ds
    da_ref[...] = dL_ds * sig                        # dL/da

    # second derivatives (per-element 2x2 Hessian, symmetric)
    hmm_ref[...] = inv_s2                            # d2L/dm2
    hma_ref[...] = 2.0 * r * inv_s3 * sig            # d2L/dm da
    d2L_ds2 = 3.0 * r2 * inv_s4 - inv_s2
    haa_ref[...] = d2L_ds2 * sig * sig + dL_ds * sig * (1.0 - sig)  # d2L/da2


def _uncertainty_loss_kernel(m_ref, a_ref, y_ref, loss_ref):
    m = m_ref[...].astype(jnp.float32)
    a = a_ref[...].astype(jnp.float32)
    y = y_ref[...].astype(jnp.float32)
    e = jnp.exp(-jnp.abs(a))
    s = jnp.maximum(a, 0.0) + jnp.log1p(e)
    r = y - m
    inv_s = 1.0 / s
    loss_ref[...] = 0.5 * (r * inv_s) * (r * inv_s) + jnp.log(s) + _HALF_LOG_2PI


def _pick_tile_rows(rows, requested, default, *, n_in, n_out, in_itemsize):
    """Tile rows: VMEM-bounded, (8,128)-aligned, >= 2 grid tiles when possible."""
    # Double-buffered VMEM footprint per tile row (bytes); outputs are f32.
    per_row = 2 * _LANES * (n_in * in_itemsize + n_out * 4)
    vmem_max = max(8, (_VMEM_TILE_BUDGET // per_row) // 8 * 8)
    t = default if requested is None else int(requested)
    t = max(1, min(t, vmem_max, rows))
    if rows <= 8:
        # Single block covering the whole array (block == full array dims).
        return rows
    # Guarantee >= 2 grid tiles so the "parallel" axis shards across both v7x
    # TensorCores (each with its own ~3.2 TB/s HBM path).
    t = min(t, pl.cdiv(rows, 2))
    # Round to a multiple of 8: keeps blocks (8,128)-aligned and stores
    # unmasked on every tile except the ragged last one.
    return max(8, (t // 8) * 8)


def uncertainty_autograd_loss(y_pred, y_true, only_loss=False,
                              planar_outputs=False, tile_rows=None):
    """Pallas TPU implementation of UncertaintyAutogradLoss.forward."""
    assert y_pred.shape[-1] == 2, "last dim of y_pred must be (mean, raw_std)"
    lead_shape = y_pred.shape[:-1]
    assert y_true.shape == lead_shape

    total = int(np.prod(lead_shape, dtype=np.int64)) if lead_shape else 1
    f32 = jnp.float32

    # Only pad the flattened leading dims up to the 128-lane boundary (no pad
    # at all when already aligned). Ragged row-tiles are masked by the grid.
    rows = pl.cdiv(total, _LANES)
    padded_total = rows * _LANES

    def to_rows(x):
        x = x.reshape(total)
        if padded_total != total:
            x = jnp.pad(x, (0, padded_total - total))   # a=0 -> s=log 2: safe
        return x.reshape(rows, _LANES)

    # TODO(synk): this (mean, raw_std) de-interleave is an XLA relayout pass;
    # an in-kernel lane-pair split is not robustly expressible in Mosaic.
    m = to_rows(y_pred[..., 0])
    a = to_rows(y_pred[..., 1])
    y = to_rows(y_true)

    in_itemsize = max(np.dtype(y_pred.dtype).itemsize,
                      np.dtype(y_true.dtype).itemsize)
    n_out = 1 if only_loss else 6
    default_rows = _DEFAULT_TILE_ROWS_LOSS if only_loss else _DEFAULT_TILE_ROWS_FULL
    tr = _pick_tile_rows(rows, tile_rows, default_rows,
                         n_in=3, n_out=n_out, in_itemsize=in_itemsize)
    grid = (pl.cdiv(rows, tr),)

    spec = pl.BlockSpec((tr, _LANES), lambda i: (i, 0))
    cparams = pltpu.CompilerParams(dimension_semantics=("parallel",))
    cost = pl.CostEstimate(
        flops=(12 if only_loss else 30) * padded_total,
        transcendentals=3 * padded_total,
        bytes_accessed=padded_total * (3 * in_itemsize + 4 * n_out))

    def unflatten(x):
        if padded_total == total:
            return x.reshape(lead_shape)               # free view, no copy
        return x.reshape(padded_total)[:total].reshape(lead_shape)

    if only_loss:
        loss = pl.pallas_call(
            _uncertainty_loss_kernel,
            out_shape=jax.ShapeDtypeStruct((rows, _LANES), f32),
            grid=grid,
            in_specs=[spec, spec, spec],
            out_specs=spec,
            compiler_params=cparams,
            cost_estimate=cost,
        )(m, a, y)
        return unflatten(loss)

    out_shape = tuple(jax.ShapeDtypeStruct((rows, _LANES), f32)
                      for _ in range(6))
    loss, dm, da, hmm, hma, haa = pl.pallas_call(
        _uncertainty_full_kernel,
        out_shape=out_shape,
        grid=grid,
        in_specs=[spec, spec, spec],
        out_specs=(spec,) * 6,
        compiler_params=cparams,
        cost_estimate=cost,
    )(m, a, y)

    loss = unflatten(loss)
    if planar_outputs:
        # Lane-dense planes, no interleaving relayout (cheapest output path).
        return (loss,
                (unflatten(dm), unflatten(da)),
                (unflatten(hmm), unflatten(hma), unflatten(haa)))

    # Torch-compatible interleaved layouts. TODO(synk): these stacks are the
    # remaining XLA relayout passes (in-kernel lane interleave not robustly
    # lowerable); dd uses a single stack instead of nested stacks.
    d_loss = jnp.stack([unflatten(dm), unflatten(da)], axis=-1)
    dd_loss = jnp.stack([unflatten(hmm), unflatten(hma),
                         unflatten(hma), unflatten(haa)],
                        axis=-1).reshape(*lead_shape, 2, 2)
    return loss, d_loss, dd_loss


# ---------- pure-JAX autodiff reference (mirrors the torch.autograd path) ----------
def _ref_loss_fn(yp, yt):
    m = yp[..., 0]
    s = jax.nn.softplus(yp[..., 1])
    return 0.5 * jnp.square((yt - m) / s) + jnp.log(s) + _HALF_LOG_2PI


def _reference(y_pred, y_true):
    loss = _ref_loss_fn(y_pred, y_true)
    grad_fn = jax.grad(lambda z: _ref_loss_fn(z, y_true).sum())
    d_loss = grad_fn(y_pred)
    rows = []
    for i in range(2):
        gi = jax.grad(lambda z, i=i: grad_fn(z)[..., i].sum())(y_pred)
        rows.append(gi[..., None, :])
    dd_loss = jnp.concatenate(rows, axis=-2)
    return loss, d_loss, dd_loss


if __name__ == "__main__":
    key = jax.random.PRNGKey(0)
    k1, k2 = jax.random.split(key)
    # batch=2, channels=4, spatial 23x21 (total=3864: deliberately NOT a
    # multiple of 128 so the 128-pad + ragged-tile path is exercised);
    # trailing 2 = (mean, raw_std).
    y_pred = jax.random.normal(k1, (2, 4, 23, 21, 2), dtype=jnp.float32)
    y_true = jax.random.normal(k2, (2, 4, 23, 21), dtype=jnp.float32)
    ref_loss, ref_d, ref_dd = _reference(y_pred, y_true)

    # tile_rows=8 exercises the multi-tile pipelined grid + masked last block.
    loss, d_loss, dd_loss = jax.block_until_ready(
        uncertainty_autograd_loss(y_pred, y_true, tile_rows=8))
    np.testing.assert_allclose(np.asarray(loss), np.asarray(ref_loss),
                               rtol=1e-4, atol=1e-4)
    np.testing.assert_allclose(np.asarray(d_loss), np.asarray(ref_d),
                               rtol=1e-4, atol=1e-4)
    np.testing.assert_allclose(np.asarray(dd_loss), np.asarray(ref_dd),
                               rtol=1e-4, atol=1e-4)

    # Default tile selection (auto-sized, >= 2 grid tiles).
    loss2, d2, dd2 = jax.block_until_ready(
        uncertainty_autograd_loss(y_pred, y_true))
    np.testing.assert_allclose(np.asarray(d2), np.asarray(ref_d),
                               rtol=1e-4, atol=1e-4)
    np.testing.assert_allclose(np.asarray(dd2), np.asarray(ref_dd),
                               rtol=1e-4, atol=1e-4)

    # only_loss fast path (dedicated 1-output kernel).
    loss_only = jax.block_until_ready(
        uncertainty_autograd_loss(y_pred, y_true, only_loss=True))
    np.testing.assert_allclose(np.asarray(loss_only), np.asarray(ref_loss),
                               rtol=1e-4, atol=1e-4)

    # Small 128-aligned shape: exercises the zero-pad-free path + full block.
    yp_s = jax.random.normal(k1, (4, 64, 2), dtype=jnp.float32)
    yt_s = jax.random.normal(k2, (4, 64), dtype=jnp.float32)
    rl, rd, rdd = _reference(yp_s, yt_s)
    ls, ds, dds = jax.block_until_ready(
        uncertainty_autograd_loss(yp_s, yt_s))
    np.testing.assert_allclose(np.asarray(ls), np.asarray(rl), rtol=1e-4, atol=1e-4)
    np.testing.assert_allclose(np.asarray(ds), np.asarray(rd), rtol=1e-4, atol=1e-4)
    np.testing.assert_allclose(np.asarray(dds), np.asarray(rdd), rtol=1e-4, atol=1e-4)

    print("KERNEL_OK")
</pallas_src>

<mosaic_0001>
module attributes {stable_mosaic.version = 11 : i64} {
  func.func @_uncertainty_full_kernel(%arg0: i32, %arg1: memref<8x128xf32, #tpu.memory_space<vmem>>, %arg2: memref<8x128xf32, #tpu.memory_space<vmem>>, %arg3: memref<8x128xf32, #tpu.memory_space<vmem>>, %arg4: memref<8x128xf32, #tpu.memory_space<vmem>>, %arg5: memref<8x128xf32, #tpu.memory_space<vmem>>, %arg6: memref<8x128xf32, #tpu.memory_space<vmem>>, %arg7: memref<8x128xf32, #tpu.memory_space<vmem>>, %arg8: memref<8x128xf32, #tpu.memory_space<vmem>>, %arg9: memref<8x128xf32, #tpu.memory_space<vmem>>) attributes {dimension_semantics = [#tpu.dimension_semantics<parallel>], iteration_bounds = array<i64: 4>, scalar_prefetch = 0 : i64, scratch_operands = 0 : i64, tpu.core_type = #tpu.core_type<tc>, window_params = [{transform_indices = @transform_0, window_bounds = array<i64: 8, 128>}, {transform_indices = @transform_1, window_bounds = array<i64: 8, 128>}, {transform_indices = @transform_2, window_bounds = array<i64: 8, 128>}, {transform_indices = @transform_3, window_bounds = array<i64: 8, 128>}, {transform_indices = @transform_4, window_bounds = array<i64: 8, 128>}, {transform_indices = @transform_5, window_bounds = array<i64: 8, 128>}, {transform_indices = @transform_6, window_bounds = array<i64: 8, 128>}, {transform_indices = @transform_7, window_bounds = array<i64: 8, 128>}, {transform_indices = @transform_8, window_bounds = array<i64: 8, 128>}]} {
    %c0 = arith.constant 0 : index
    %c0_0 = arith.constant 0 : index
    %0 = vector.load %arg1[%c0, %c0_0] : memref<8x128xf32, #tpu.memory_space<vmem>>, vector<8x128xf32>
    %c0_1 = arith.constant 0 : index
    %c0_2 = arith.constant 0 : index
    %1 = vector.load %arg2[%c0_1, %c0_2] : memref<8x128xf32, #tpu.memory_space<vmem>>, vector<8x128xf32>
    %c0_3 = arith.constant 0 : index
    %c0_4 = arith.constant 0 : index
    %2 = vector.load %arg3[%c0_3, %c0_4] : memref<8x128xf32, #tpu.memory_space<vmem>>, vector<8x128xf32>
    %3 = math.absf %1 : vector<8x128xf32>
    %cst = arith.constant 0.000000e+00 : f32
    %4 = vector.broadcast %cst : f32 to vector<8x128xf32>
    %5 = arith.subf %4, %3 : vector<8x128xf32>
    %6 = math.exp %5 : vector<8x128xf32>
    %cst_5 = arith.constant 0.000000e+00 : f32
    %7 = vector.broadcast %cst_5 : f32 to vector<8x128xf32>
    %8 = arith.maximumf %1, %7 : vector<8x128xf32>
    %9 = math.log1p %6 : vector<8x128xf32>
    %10 = arith.addf %8, %9 : vector<8x128xf32>
    %cst_6 = arith.constant 1.000000e+00 : f32
    %11 = vector.broadcast %cst_6 : f32 to vector<8x128xf32>
    %12 = arith.addf %11, %6 : vector<8x128xf32>
    %cst_7 = arith.constant 1.000000e+00 : f32
    %13 = vector.broadcast %cst_7 : f32 to vector<8x128xf32>
    %14 = arith.divf %13, %12 : vector<8x128xf32>
    %cst_8 = arith.constant 0.000000e+00 : f32
    %15 = vector.broadcast %cst_8 : f32 to vector<8x128xf32>
    %16 = arith.cmpf oge, %1, %15 : vector<8x128xf32>
    %17 = arith.mulf %6, %14 : vector<8x128xf32>
    %18 = arith.select %16, %14, %17 : vector<8x128xi1>, vector<8x128xf32>
    %19 = arith.subf %2, %0 : vector<8x128xf32>
    %20 = arith.mulf %19, %19 : vector<8x128xf32>
    %cst_9 = arith.constant 1.000000e+00 : f32
    %21 = vector.broadcast %cst_9 : f32 to vector<8x128xf32>
    %22 = arith.divf %21, %10 : vector<8x128xf32>
    %23 = arith.mulf %22, %22 : vector<8x128xf32>
    %24 = arith.mulf %23, %22 : vector<8x128xf32>
    %25 = arith.mulf %23, %23 : vector<8x128xf32>
    %cst_10 = arith.constant 5.000000e-01 : f32
    %26 = vector.broadcast %cst_10 : f32 to vector<8x128xf32>
    %27 = arith.mulf %26, %20 : vector<8x128xf32>
    %28 = arith.mulf %27, %23 : vector<8x128xf32>
    %29 = math.log %10 : vector<8x128xf32>
    %30 = arith.addf %28, %29 : vector<8x128xf32>
    %cst_11 = arith.constant 0.918938517 : f32
    %31 = vector.broadcast %cst_11 : f32 to vector<8x128xf32>
    %32 = arith.addf %30, %31 : vector<8x128xf32>
    %c0_12 = arith.constant 0 : index
    %c0_13 = arith.constant 0 : index
    %33 = vector.load %arg4[%c0_12, %c0_13] : memref<8x128xf32, #tpu.memory_space<vmem>>, vector<8x128xf32>
    tpu.vector_store %arg4[%c0_12, %c0_13], %32 {strides = array<i32>} : memref<8x128xf32, #tpu.memory_space<vmem>>, vector<8x128xf32>,
    %cst_14 = arith.constant 0.000000e+00 : f32
    %34 = vector.broadcast %cst_14 : f32 to vector<8x128xf32>
    %35 = arith.subf %34, %19 : vector<8x128xf32>
    %36 = arith.mulf %35, %23 : vector<8x128xf32>
    %c0_15 = arith.constant 0 : index
    %c0_16 = arith.constant 0 : index
    %37 = vector.load %arg5[%c0_15, %c0_16] : memref<8x128xf32, #tpu.memory_space<vmem>>, vector<8x128xf32>
    tpu.vector_store %arg5[%c0_15, %c0_16], %36 {strides = array<i32>} : memref<8x128xf32, #tpu.memory_space<vmem>>, vector<8x128xf32>,
    %38 = arith.mulf %20, %24 : vector<8x128xf32>
    %39 = arith.subf %22, %38 : vector<8x128xf32>
    %40 = arith.mulf %39, %18 : vector<8x128xf32>
    %c0_17 = arith.constant 0 : index
    %c0_18 = arith.constant 0 : index
    %41 = vector.load %arg6[%c0_17, %c0_18] : memref<8x128xf32, #tpu.memory_space<vmem>>, vector<8x128xf32>
    tpu.vector_store %arg6[%c0_17, %c0_18], %40 {strides = array<i32>} : memref<8x128xf32, #tpu.memory_space<vmem>>, vector<8x128xf32>,
    %c0_19 = arith.constant 0 : index
    %c0_20 = arith.constant 0 : index
    %42 = vector.load %arg7[%c0_19, %c0_20] : memref<8x128xf32, #tpu.memory_space<vmem>>, vector<8x128xf32>
    tpu.vector_store %arg7[%c0_19, %c0_20], %23 {strides = array<i32>} : memref<8x128xf32, #tpu.memory_space<vmem>>, vector<8x128xf32>,
    %cst_21 = arith.constant 2.000000e+00 : f32
    %43 = vector.broadcast %cst_21 : f32 to vector<8x128xf32>
    %44 = arith.mulf %43, %19 : vector<8x128xf32>
    %45 = arith.mulf %44, %24 : vector<8x128xf32>
    %46 = arith.mulf %45, %18 : vector<8x128xf32>
    %c0_22 = arith.constant 0 : index
    %c0_23 = arith.constant 0 : index
    %47 = vector.load %arg8[%c0_22, %c0_23] : memref<8x128xf32, #tpu.memory_space<vmem>>, vector<8x128xf32>
    tpu.vector_store %arg8[%c0_22, %c0_23], %46 {strides = array<i32>} : memref<8x128xf32, #tpu.memory_space<vmem>>, vector<8x128xf32>,
    %cst_24 = arith.constant 3.000000e+00 : f32
    %48 = vector.broadcast %cst_24 : f32 to vector<8x128xf32>
    %49 = arith.mulf %48, %20 : vector<8x128xf32>
    %50 = arith.mulf %49, %25 : vector<8x128xf32>
    %51 = arith.subf %50, %23 : vector<8x128xf32>
    %52 = arith.mulf %51, %18 : vector<8x128xf32>
    %53 = arith.mulf %52, %18 : vector<8x128xf32>
    %54 = arith.mulf %39, %18 : vector<8x128xf32>
    %cst_25 = arith.constant 1.000000e+00 : f32
    %55 = vector.broadcast %cst_25 : f32 to vector<8x128xf32>
    %56 = arith.subf %55, %18 : vector<8x128xf32>
    %57 = arith.mulf %54, %56 : vector<8x128xf32>
    %58 = arith.addf %53, %57 : vector<8x128xf32>
    %c0_26 = arith.constant 0 : index
    %c0_27 = arith.constant 0 : index
    %59 = vector.load %arg9[%c0_26, %c0_27] : memref<8x128xf32, #tpu.memory_space<vmem>>, vector<8x128xf32>
    tpu.vector_store %arg9[%c0_26, %c0_27], %58 {strides = array<i32>} : memref<8x128xf32, #tpu.memory_space<vmem>>, vector<8x128xf32>,
    return
  }
  func.func @transform_0(%arg0: i32) -> (i32, i32) {
    %c0_i32 = arith.constant 0 : i32
    %c0_i32_0 = arith.constant 0 : i32
    return %arg0, %c0_i32 : i32, i32
  }
  func.func @transform_1(%arg0: i32) -> (i32, i32) {
    %c0_i32 = arith.constant 0 : i32
    %c0_i32_0 = arith.constant 0 : i32
    return %arg0, %c0_i32 : i32, i32
  }
  func.func @transform_2(%arg0: i32) -> (i32, i32) {
    %c0_i32 = arith.constant 0 : i32
    %c0_i32_0 = arith.constant 0 : i32
    return %arg0, %c0_i32 : i32, i32
  }
  func.func @transform_3(%arg0: i32) -> (i32, i32) {
    %c0_i32 = arith.constant 0 : i32
    %c0_i32_0 = arith.constant 0 : i32
    return %arg0, %c0_i32 : i32, i32
  }
  func.func @transform_4(%arg0: i32) -> (i32, i32) {
    %c0_i32 = arith.constant 0 : i32
    %c0_i32_0 = arith.constant 0 : i32
    return %arg0, %c0_i32 : i32, i32
  }
  func.func @transform_5(%arg0: i32) -> (i32, i32) {
    %c0_i32 = arith.constant 0 : i32
    %c0_i32_0 = arith.constant 0 : i32
    return %arg0, %c0_i32 : i32, i32
  }
  func.func @transform_6(%arg0: i32) -> (i32, i32) {
    %c0_i32 = arith.constant 0 : i32
    %c0_i32_0 = arith.constant 0 : i32
    return %arg0, %c0_i32 : i32, i32
  }
  func.func @transform_7(%arg0: i32) -> (i32, i32) {
    %c0_i32 = arith.constant 0 : i32
    %c0_i32_0 = arith.constant 0 : i32
    return %arg0, %c0_i32 : i32, i32
  }
  func.func @transform_8(%arg0: i32) -> (i32, i32) {
    %c0_i32 = arith.constant 0 : i32
    %c0_i32_0 = arith.constant 0 : i32
    return %arg0, %c0_i32 : i32, i32
  }
}

</mosaic_0001>

<bundles_post_ra>
// kernel: tpu_custom_call.1
= control target key start
LH: loop header
LB: loop body
LE: loop exit
PB: predicated region body
PF: predicated region fallthrough
CT: control target
= control target key end

     0   :  { %s1813_s0 = inlined_call_operand.hbm [shape: f32[31,128], index: 0, kind: input, shape index: {}]   ;;  %s1814_s1 = inlined_call_operand.hbm [shape: f32[31,128], index: 1, kind: input, shape index: {}]   ;;  %s1815_s2 = inlined_call_operand.hbm [shape: f32[31,128], index: 2, kind: input, shape index: {}]   ;;  %s1816_s3 = inlined_call_operand.hbm [shape: f32[31,128], index: 3, kind: output, shape index: {0}]   ;;  %s1817_s4 = inlined_call_operand.hbm [shape: f32[31,128], index: 4, kind: output, shape index: {1}]   ;;  %s1818_s5 = inlined_call_operand.hbm [shape: f32[31,128], index: 5, kind: output, shape index: {2}]   ;;  %s1819_s6 = inlined_call_operand.hbm [shape: f32[31,128], index: 6, kind: output, shape index: {3}]   ;;  %s1820_s7 = inlined_call_operand.hbm [shape: f32[31,128], index: 7, kind: output, shape index: {4}]   ;;  %s1821_s8 = inlined_call_operand.hbm [shape: f32[31,128], index: 8, kind: output, shape index: {5}]  }
   0x1   :  { %1838 = sst [smem:[#allocation28_spill]] %s1814_s1 }
   0x2   :  { %14 = vsyncpa [#allocation3], 0 }
   0x3   :  { %16 = vsyncpa [#allocation3 + $0x1], 0 }
   0x4   :  { %17 = vsyncpa [#allocation6], 0 }
   0x5   :  { %19 = vsyncpa [#allocation6 + $0x1], 0 }
   0x6   :  { %20 = vsyncpa [#allocation4], 0 }
   0x7   :  { %22 = vsyncpa [#allocation4 + $0x1], 0 }
   0x8   :  { %23 = vsyncpa [#allocation10], 0 }
   0x9   :  { %25 = vsyncpa [#allocation10 + $0x1], 0 }
   0xa   :  { %26 = vsyncpa [#allocation13], 0 }
   0xb   :  { %28 = vsyncpa [#allocation13 + $0x1], 0 }
   0xc   :  { %29 = vsyncpa [#allocation16], 0 }
   0xd   :  { %31 = vsyncpa [#allocation16 + $0x1], 0  ;;  %s1359_s27 = smov 0   ;;  %s1361_s28 = smov 0  }
   0xe   :  { %s1363_s29 = smov 0   ;;  %s1365_s30 = smov 0  }
   0xf LB: > { %1839 = sst [smem:[#allocation23_spill]] %s1291_s27  ;;  %s1380_s9 = sadd.s32 4294967295, %s1303_s30   ;;  %s1303_s30 = sphi %s1365_s30, %s1867_s30   ;;  %s1299_s29 = sphi %s1363_s29, %s1872_s29   ;;  %s1295_s28 = sphi %s1361_s28, %s1871_s28   ;;  %s1291_s27 = sphi %s1359_s27, %s1870_s27  }
  0x10   : > { %1840 = sst [smem:[#allocation24_spill]] %s1299_s29  ;;  %s1822_s10 = sadd.s32 4294967294, %s1303_s30  }
  0x11   : > { %s1384_s11 = sadd.s32 1, %s1303_s30   ;;  %s44_s12 = sadd.s32 1, %s1299_s29 }
  0x12   : > { %1841 = sst [smem:[#allocation25_spill]] %s1384_s11  ;;  %s41_s13 = ssub.s32 %s1303_s30, %s1384_s11 }
  0x13   : > { %p51_p0 = scmp.ne.s32.totalorder %s1299_s29, %s1295_s28  ;;  %p42_p1 = scmp.eq.s32.totalorder %s41_s13, 0 }
  0x14   : > { %p52_p2 = scmp.eq.s32.totalorder %s1303_s30, 0  ;;  %p57_p3 = scmp.ne.s32.totalorder %s1295_s28, %s1291_s27 }
  0x15   : > { %p58_p4 = scmp.eq.s32.totalorder %s1380_s9, 0  ;;  %p133_p7 = scmp.eq.s32.totalorder %s1380_s9, 3 }
  0x16   : > { %s1396_s14 = scalar_select %p42_p1, %s1299_s29, %s44_s12  }
  0x17   : > { %p53_p5 = por %p52_p2, %p51_p0  ;;  %p1398_p6 = por %p58_p4, %p57_p3 }
  0x18   : > { %1842 = sst [smem:[#allocation26_spill]] %s1396_s14  ;;  %p139_p8 = scmp.eq.s32.totalorder %s1822_s10, 3 }
  0x19   : > { %s1843_s15 = scalar_select %p1398_p6, 1, 0 }
  0x1a   : > { %p947_p9 = scmp.lt.s32.totalorder %s1303_s30, 4  ;;  %p1406_p10 = por %p133_p7, %p51_p0 }
  0x1b   : > { %p1410_p11 = por %p139_p8, %p57_p3  ;;  %s1823_s18 = sand.u32 1, %s1299_s29  }
  0x1c   : > { %s1844_s16 = scalar_select %p1406_p10, 1, 0 }
  0x1d   : > { %s1845_s17 = scalar_select %p1410_p11, 1, 0 }
  0x1e   : > { %s1416_s19 = sshll.u32 %s1303_s30, 7  ;;  %s1420_s20 = sshll.u32 %s1823_s18, 3 }
  0x1f   : > { %1846 = sst [smem:[#allocation27_spill]] %s1845_s17  ;;  %p1422_p12 = pnand %p947_p9, %p53_p5 }
  0x20   : > { %s307_s22 = sand.u32 1, %s1303_s30   ;;  %s1848_s1 = sld [smem:[#allocation28_spill]] }
  0x21   : > { %s1847_s21 = scalar_select %p1422_p12, 1, 0 }
  0x22   : > { %s311_s26 = scalar_lea.vmem [#allocation5], %s1420_s20  ;;  %s1437_s13 = scalar_lea.sflag [#allocation6], %s307_s22 }
  0x23   : > { %s318_s12 = sshll.u32 %s311_s26, 4  ;;  %p1443_p1 = pneg %p1422_p12  ;;  %s1434_s12 = int_to_ptr.vmem [resolvable:$true] %s318_s12 }
  0x26   : > { %s1431_s25 = scalar_lea.hbm %s1848_s1, %s1416_s19  ;;  %s996_s26 = scalar_lea.hbm %s1848_s1, 512 }
  0x27   : > { %s991_s10 = scalar_lea.hbm %s1431_s25, 128  ;;  %p997_p4 = scmp.lt.u32.totalorder %s1431_s25, %s1848_s1 }
  0x28   : > { %p992_p0 = scmp.ne.s32.totalorder %s1431_s25, %s991_s10  ;;  %p998_p5 = scmp.lt.u32.totalorder %s996_s26, %s991_s10 }
  0x29   : > { %p1000_p8 = scmp.lt.u32.totalorder %s991_s10, %s1431_s25 }
  0x2a   : > { %p994_p2 = pnand %p1443_p1, %p992_p0  ;;  %p999_p7 = por %p998_p5, %p997_p4 }
  0x2c   : > { %p995_p3 = pneg %p994_p2  ;;  %p1001_p9 = por %p1000_p8, %p999_p7 }
  0x2e   : > { %p1002_p13 = pnand %p1001_p9, %p995_p3 }
  0x30   : > { %1005 = shalt.err (!%p1002_p13)
}
  0x31   : > { %s1006_s22 = scalar_lea.vmem %s1434_s12, 128  ;;  %s1305_s23 = smov [#allocation5]  }
  0x32   : > { %p1007_p0 = scmp.ne.s32.totalorder %s1434_s12, %s1006_s22  ;;  %s1011_s24 = sshll.u32 %s1305_s23, 4  ;;  %s1012_s24 = int_to_ptr.vmem [resolvable:$false] %s1011_s24 }
  0x33   : > { %s1013_s11 = scalar_lea.vmem %s1012_s24, 256  ;;  %p1014_p10 = scmp.lt.s32.totalorder %s1434_s12, %s1012_s24 }
  0x34   : > { %p1009_p2 = pnand %p1007_p0, %p1443_p1  ;;  %p1015_p6 = scmp.lt.s32.totalorder %s1013_s11, %s1006_s22 }
  0x36   : > { %p1010_p11 = pneg %p1009_p2  ;;  %p1016_p4 = por %p1015_p6, %p1014_p10 }
  0x38   : > { %p1017_p5 = pnand %p1016_p4, %p1010_p11 }
  0x3a   : > { %1020 = shalt.err (!%p1017_p5)
}
  0x3b   : > { %924 = dma.hbm_to_vmem [thread:$0]  (!%p1422_p12), %s1431_s25, 128, %s1434_s12, %s1437_s13  }
  0x3c   : > { %p341_p13 = scmp.lt.s32.totalorder %s1303_s30, 5  ;;  %s1472_s26 = scalar_lea.hbm %s1813_s0, %s1416_s19 }
  0x3d   : > { %p1850_p6 = scmp.ge.s32.totalorder %s1303_s30, 1  ;;  %s293_s23 = scalar_lea.vmem [#allocation2], %s1420_s20 }
  0x3e   : > { %s300_s24 = sshll.u32 %s293_s23, 4  ;;  %s1852_s11 = sand.u32 1, %s1299_s29   ;;  %s301_s24 = int_to_ptr.vmem [resolvable:$true] %s300_s24 }
  0x3f   : > { %p1476_p10 = pnand %p1850_p6, %p341_p13  ;;  %s290_s25 = scalar_lea.sflag [#allocation3], %s1852_s11 }
  0x40   : > { %s1021_s12 = scalar_lea.hbm %s1472_s26, 128  ;;  %s1026_s1 = scalar_lea.hbm %s1813_s0, 512 }
  0x41   : > { %s1851_s22 = scalar_select %p1476_p10, 1, 0 }
  0x42   : > { %p1022_p11 = scmp.ne.s32.totalorder %s1472_s26, %s1021_s12  ;;  %p1027_p8 = scmp.lt.u32.totalorder %s1472_s26, %s1813_s0 }
  0x43   : > { %p1028_p9 = scmp.lt.u32.totalorder %s1026_s1, %s1021_s12  ;;  %p1030_p2 = scmp.lt.u32.totalorder %s1021_s12, %s1472_s26 }
  0x44   : > { %p1024_p3 = pnand %p1022_p11, %p1443_p1 }
  0x45   : > { %p1029_p0 = por %p1028_p9, %p1027_p8 }
  0x46   : > { %p1025_p7 = pneg %p1024_p3 }
  0x47   : > { %p1031_p4 = por %p1030_p2, %p1029_p0 }
  0x49   : > { %p1032_p5 = pnand %p1031_p4, %p1025_p7 }
  0x4b   : > { %1035 = shalt.err (!%p1032_p5)
}
  0x4c   : > { %s1036_s23 = scalar_lea.vmem %s301_s24, 128  ;;  %s1306_s11 = smov [#allocation2]  }
  0x4d   : > { %p1037_p13 = scmp.ne.s32.totalorder %s301_s24, %s1036_s23  ;;  %s1041_s29 = sshll.u32 %s1306_s11, 4  ;;  %s1042_s29 = int_to_ptr.vmem [resolvable:$false] %s1041_s29 }
  0x4e   : > { %s1043_s10 = scalar_lea.vmem %s1042_s29, 256  ;;  %p1044_p3 = scmp.lt.s32.totalorder %s301_s24, %s1042_s29 }
  0x4f   : > { %p1039_p6 = pnand %p1037_p13, %p1443_p1  ;;  %p1045_p10 = scmp.lt.s32.totalorder %s1043_s10, %s1036_s23 }
  0x51   : > { %p1040_p11 = pneg %p1039_p6  ;;  %p1046_p12 = por %p1045_p10, %p1044_p3 }
  0x53   : > { %p1047_p8 = pnand %p1046_p12, %p1040_p11 }
  0x55   : > { %1050 = shalt.err (!%p1047_p8)
}
  0x56   : > { %p1853_p9 = scmp.ne.s32.totalorder %s1847_s21, 0  ;;  %s1504_s17 = scalar_lea.hbm %s1815_s2, %s1416_s19 }
  0x57   : > { %s329_s29 = scalar_lea.vmem [#allocation7], %s1420_s20  ;;  %s1051_s14 = scalar_lea.hbm %s1504_s17, 128 }
  0x58   : > { %921 = dma.hbm_to_vmem [thread:$0]  (!%p1853_p9), %s1472_s26, 128, %s301_s24, %s290_s25  }
  0x59   : > { %s336_s12 = sshll.u32 %s329_s29, 4  ;;  %p1052_p12 = scmp.ne.s32.totalorder %s1504_s17, %s1051_s14  ;;  %s337_s12 = int_to_ptr.vmem [resolvable:$true] %s336_s12 }
  0x5a   : > { %s1056_s26 = scalar_lea.hbm %s1815_s2, 512  ;;  %p1057_p0 = scmp.lt.u32.totalorder %s1504_s17, %s1815_s2 }
  0x5b   : > { %p1054_p10 = pnand %p1052_p12, %p1443_p1  ;;  %p1058_p2 = scmp.lt.u32.totalorder %s1056_s26, %s1051_s14 }
  0x5c   : > { %p1060_p5 = scmp.lt.u32.totalorder %s1051_s14, %s1504_s17 }
  0x5d   : > { %p1055_p7 = pneg %p1054_p10  ;;  %p1059_p4 = por %p1058_p2, %p1057_p0 }
  0x5f   : > { %p1061_p13 = por %p1060_p5, %p1059_p4 }
  0x61   : > { %p1062_p6 = pnand %p1061_p13, %p1055_p7 }
  0x63   : > { %1065 = shalt.err (!%p1062_p6)
}
  0x64   : > { %s1066_s19 = scalar_lea.vmem %s337_s12, 128  ;;  %s1307_s20 = smov [#allocation7]  }
  0x65   : > { %p1067_p11 = scmp.ne.s32.totalorder %s337_s12, %s1066_s19  ;;  %s1071_s10 = sshll.u32 %s1307_s20, 4  ;;  %s1072_s10 = int_to_ptr.vmem [resolvable:$false] %s1071_s10 }
  0x66   : > { %s1073_s1 = scalar_lea.vmem %s1072_s10, 256  ;;  %p1074_p12 = scmp.lt.s32.totalorder %s337_s12, %s1072_s10 }
  0x67   : > { %p1069_p3 = pnand %p1067_p11, %p1443_p1  ;;  %p1075_p10 = scmp.lt.s32.totalorder %s1073_s1, %s1066_s19 }
  0x69   : > { %p1070_p8 = pneg %p1069_p3  ;;  %p1076_p9 = por %p1075_p10, %p1074_p12 }
  0x6b   : > { %p1077_p0 = pnand %p1076_p9, %p1070_p8 }
  0x6d   : > { %1080 = shalt.err (!%p1077_p0)
}
  0x6e   : > { %p1854_p2 = scmp.ne.s32.totalorder %s1847_s21, 0  ;;  %p1855_p7 = scmp.ne.s32.totalorder %s1851_s22, 0 }
  0x6f   : > { %s1528_s18 = sand.u32 (!%p1855_p7), 1, %s1295_s28   ;;  %p1856_p1 = scmp.ne.s32.totalorder (!%p1855_p7), %s1843_s15, 0 }
  0x70   : > { %927 = dma.hbm_to_vmem [thread:$0]  (!%p1854_p2), %s1504_s17, 128, %s337_s12, %s1437_s13  }
  0x71   : > { %345 = sbr.rel (%p1855_p7) target bundleno = 315 (0x13b), region = 32  ;;  %s1531_s27 = sshll.u32 (!%p1855_p7), %s1528_s18, 3 }
  0x72   : > { %s348_s29 = scalar_lea.sflag (!%p1855_p7), [#allocation3], %s1528_s18  ;;  %s351_s14 = scalar_lea.vmem (!%p1855_p7), [#allocation2], %s1531_s27 }
  0x78   : > { %1266 = dma.done.wait (%p1856_p1), %s348_s29, 128  }
  0x79   : > { %1268 = vsyncadd (%p1856_p1), %s348_s29, 4294967168  ;;  %s1540_s21 = sand.u32 1, %s1380_s9   ;;  %s360_s22 = scalar_lea.vmem [#allocation5], %s1531_s27 }
  0x7a   : > { %s357_s13 = scalar_lea.sflag [#allocation6], %s1540_s21 }
  0x7b   : > { %1270 = dma.done.wait (%p1856_p1), %s357_s13, 256  }
  0x7c   : > { %1272 = vsyncadd (%p1856_p1), %s357_s13, 4294967040  ;;  %v438_v0 = vld [vmem:[%s360_s22] sm:$0xff]  ;;  %v437_v15 = vld [vmem:[%s351_s14] sm:$0xff]  ;;  %s369_s15 = scalar_lea.vmem [#allocation7], %s1531_s27  ;;  %s408_s17 = scalar_lea.vmem [#allocation9], %s1531_s27 }
  0x7d   : > { %v440_v1 = vand.u32 2147483647, %v438_v0  ;;  %v444_v11 = vmax.f32 %v438_v0, 0.0  ;;  %v439_v16 = vld [vmem:[%s369_s15] sm:$0xff]  ;;  %s548_s12 = sshll.u32 %s408_s17, 4  ;;  %s422_s23 = scalar_lea.vmem [#allocation12], %s1531_s27  ;;  %s1562_s12 = int_to_ptr.vmem [resolvable:$true] %s548_s12 }
  0x7e   : > { %v461_v17 = vsub.f32 %v439_v16, %v437_v15  ;;  %s574_s11 = sshll.u32 %s422_s23, 4  ;;  %s1834_s26 = scalar_lea.vmem [#allocation8], %s1531_s27  ;;  %vm458_vm1 = vcmp.ge.f32.partialorder %v438_v0, 0.0  ;;  %s1564_s11 = int_to_ptr.vmem [resolvable:$true] %s574_s11 }
  0x7f   : > { %v441_v2 = vsub.f32 0.0, %v440_v1  ;;  %s535_s24 = sshll.u32 %s1834_s26, 4  ;;  %s1833_s25 = scalar_lea.vmem [#allocation11], %s1531_s27  ;;  %s1568_s24 = int_to_ptr.vmem [resolvable:$true] %s535_s24 }
  0x80   : > { %v462_v19 = vmul.f32 %v461_v17, %v461_v17  ;;  %s561_s19 = sshll.u32 %s1833_s25, 4  ;;  %s1560_s20 = sshll.u32 %s1380_s9, 7  ;;  %v475_v21 = vsub.f32 0.0, %v461_v17  ;;  %v483_v26 = vmul.f32 2.0, %v461_v17  ;;  %s1570_s19 = int_to_ptr.vmem [resolvable:$true] %s561_s19 }
  0x81   : > { %v442_v3 = vmul.f32 1.442695, %v441_v2  ;;  %s1580_s1 = scalar_lea.hbm %s1819_s6, %s1560_s20  ;;  %s1595_s13 = scalar_lea.hbm %s1817_s4, %s1560_s20 }
  0x82   : > { %v468_v22 = vmul.f32 0.5, %v462_v19  ;;  %v487_v27 = vmul.f32 3.0, %v462_v19  ;;  %s1836_s22 = scalar_lea.sflag [#allocation13], %s1540_s21  ;;  %s1081_s15 = scalar_lea.vmem %s1564_s11, 128 }
  0x83   : > { %981 = vpow2.f32 %v442_v3  ;;  %p1082_p9 = scmp.ne.s32.totalorder %s1564_s11, %s1081_s15  ;;  %p1857_p4 = scmp.ne.s32.totalorder %s1844_s16, 0 }
  0x85   : > { %p1083_p5 = pnand %p1082_p9, %p1857_p4 }
  0x87   : > { %p1084_p13 = pneg %p1083_p5 }
  0x8d   : > { %v982_v4 = vpop.eup %981 }
  0x8e   : > { %v445_v5 = vadd.f32 1.0, %v982_v4  ;;  %v448_v6 = vmul.f32 -0.5, %v982_v4  ;;  %v451_v8 = vand.u32 2147483647, %v982_v4 }
  0x90   : > { %983 = vlog2.f32 %v445_v5  ;;  %v449_v7 = vadd.f32 1.0, %v448_v6  ;;  %vm452_vm0 = vcmp.lt.f32.partialorder %v451_v8, 0.0004427343 }
  0x91   : > { %985 = vrcp.f32 %v445_v5 }
  0x92   : > { %v450_v9 = vmul.f32 %v982_v4, %v449_v7 }
  0x9a   : > { %v984_v10 = vpop.eup %983 }
  0x9b   : > { %v447_v12 = vmul.f32 0.6931472, %v984_v10  ;;  %v986_v18 = vpop.eup %985 }
  0x9c   : > { %v459_v20 = vmul.f32 %v986_v18, %v982_v4 }
  0x9d   : > { %v453_v13 = vsel %vm452_vm0, %v450_v9, %v447_v12 }
  0x9e   : > { %v454_v14 = vadd.f32 %v453_v13, %v444_v11  ;;  %v1582_v29 = vsel %vm458_vm1, %v986_v18, %v459_v20 }
  0xa0   : > { %987 = vrcp.f32 %v454_v14 }
  0xa1   : > { %989 = vlog2.f32 %v454_v14 }
  0xaa   : > { %v1566_v23 = vpop.eup %987 }
  0xab   : > { %v990_v24 = vpop.eup %989  ;;  %v1574_v25 = vmul.f32 %v1566_v23, %v1566_v23 }
  0xac   : > { %v471_v28 = vmul.f32 0.6931472, %v990_v24 }
  0xad   : > { %v476_v30 = vmul.f32 %v475_v21, %v1574_v25  ;;  %482 = vst [vmem:[%s422_s23] sm:$0xff] %v1574_v25  ;;  %v469_v31 = vmul.f32 %v468_v22, %v1574_v25  ;;  %v466_v32 = vmul.f32 %v1566_v23, %v1574_v25  ;;  %v467_v33 = vmul.f32 %v1574_v25, %v1574_v25  ;;  %s1308_s23 = smov [#allocation12]  }
  0xae   : > { %s1085_s9 = sshll.u32 %s1308_s23, 4  ;;  %s1086_s9 = int_to_ptr.vmem [resolvable:$false] %s1085_s9 }
  0xaf   : > { %s1087_s10 = scalar_lea.vmem %s1086_s9, 256  ;;  %p1088_p6 = scmp.lt.s32.totalorder %s1564_s11, %s1086_s9 }
  0xb0   : > { %p1089_p11 = scmp.lt.s32.totalorder %s1087_s10, %s1081_s15 }
  0xb2   : > { %p1090_p3 = por %p1089_p11, %p1088_p6 }
  0xb4   : > { %p1091_p8 = pnand %p1090_p3, %p1084_p13 }
  0xb6   : > { %1094 = shalt.err (!%p1091_p8)
}
  0xb7   : > { %s1095_s29 = scalar_lea.hbm %s1580_s1, 128  ;;  %s1099_s23 = scalar_lea.hbm %s1819_s6, 512 }
  0xb8   : > { %p1096_p12 = scmp.ne.s32.totalorder %s1580_s1, %s1095_s29  ;;  %p1100_p2 = scmp.lt.u32.totalorder %s1580_s1, %s1819_s6 }
  0xb9   : > { %p1101_p7 = scmp.lt.u32.totalorder %s1099_s23, %s1095_s29  ;;  %p1103_p9 = scmp.lt.u32.totalorder %s1095_s29, %s1580_s1 }
  0xba   : > { %p1097_p10 = pnand %p1096_p12, %p1857_p4 }
  0xbb   : > { %p1102_p1 = por %p1101_p7, %p1100_p2 }
  0xbc   : > { %p1098_p0 = pneg %p1097_p10 }
  0xbd   : > { %p1104_p5 = por %p1103_p9, %p1102_p1 }
  0xbf   : > { %p1105_p13 = pnand %p1104_p5, %p1098_p0 }
  0xc1   : > { %1108 = shalt.err (!%p1105_p13)
}
  0xc2   : > { %909 = dma.vmem_to_hbm [thread:$0]  (%p1857_p4), %s1564_s11, 128, %s1580_s1, %s1836_s22   ;;  %477 = vst [vmem:[%s408_s17] sm:$0xff] %v476_v30  ;;  %v472_v34 = vadd.f32 %v471_v28, %v469_v31  ;;  %v478_v35 = vmul.f32 %v466_v32, %v462_v19  ;;  %v484_v36 = vmul.f32 %v483_v26, %v466_v32  ;;  %v488_v37 = vmul.f32 %v487_v27, %v467_v33 }
  0xc3   : > { %s429_s26 = scalar_lea.vmem [#allocation14], %s1531_s27  ;;  %s1835_s15 = scalar_lea.vmem [#allocation15], %s1531_s27  ;;  %v492_v38 = vsub.f32 1.0, %v1582_v29 }
  0xc4   : > { %s1626_s25 = sshll.u32 %s429_s26, 4  ;;  %s1631_s10 = sshll.u32 %s1835_s15, 4  ;;  %s1668_s25 = int_to_ptr.vmem [resolvable:$true] %s1626_s25  ;;  %s1683_s10 = int_to_ptr.vmem [resolvable:$true] %s1631_s10 }
  0xc5   : > { %s1837_s29 = scalar_lea.sflag [#allocation10], %s1540_s21  ;;  %s1109_s14 = scalar_lea.vmem %s1562_s12, 128 }
  0xc6   : > { %p1110_p6 = scmp.ne.s32.totalorder %s1562_s12, %s1109_s14  ;;  %s1309_s17 = smov [#allocation9]  }
  0xc7   : > { %s1113_s11 = sshll.u32 %s1309_s17, 4  ;;  %s1114_s11 = int_to_ptr.vmem [resolvable:$false] %s1113_s11 }
  0xc8   : > { %p1111_p11 = pnand %p1110_p6, %p1857_p4  ;;  %s1115_s1 = scalar_lea.vmem %s1114_s11, 256 }
  0xc9   : > { %p1116_p8 = scmp.lt.s32.totalorder %s1562_s12, %s1114_s11  ;;  %p1117_p12 = scmp.lt.s32.totalorder %s1115_s1, %s1109_s14 }
  0xca   : > { %p1112_p3 = pneg %p1111_p11 }
  0xcb   : > { %p1118_p10 = por %p1117_p12, %p1116_p8 }
  0xcd   : > { %p1119_p0 = pnand %p1118_p10, %p1112_p3 }
  0xcf   : > { %1122 = shalt.err (!%p1119_p0)
}
  0xd0   : > { %s1123_s23 = scalar_lea.hbm %s1595_s13, 128  ;;  %s1127_s17 = scalar_lea.hbm %s1817_s4, 512 }
  0xd1   : > { %p1124_p2 = scmp.ne.s32.totalorder %s1595_s13, %s1123_s23  ;;  %p1128_p9 = scmp.lt.u32.totalorder %s1595_s13, %s1817_s4 }
  0xd2   : > { %p1129_p5 = scmp.lt.u32.totalorder %s1127_s17, %s1123_s23  ;;  %p1131_p6 = scmp.lt.u32.totalorder %s1123_s23, %s1595_s13 }
  0xd3   : > { %p1125_p7 = pnand %p1124_p2, %p1857_p4 }
  0xd4   : > { %p1130_p13 = por %p1129_p5, %p1128_p9 }
  0xd5   : > { %p1126_p1 = pneg %p1125_p7 }
  0xd6   : > { %p1132_p11 = por %p1131_p6, %p1130_p13 }
  0xd8   : > { %p1133_p3 = pnand %p1132_p11, %p1126_p1 }
  0xda   : > { %1136 = shalt.err (!%p1133_p3)
}
  0xdb   : > { %907 = dma.vmem_to_hbm [thread:$0]  (%p1857_p4), %s1562_s12, 128, %s1595_s13, %s1837_s29   ;;  %v473_v39 = vadd.f32 0.9189385, %v472_v34  ;;  %v479_v40 = vsub.f32 %v1566_v23, %v478_v35  ;;  %v485_v41 = vmul.f32 %v484_v36, %v1582_v29  ;;  %v489_v42 = vsub.f32 %v488_v37, %v1574_v25 }
  0xdc   : > { %s1665_s14 = scalar_lea.hbm %s1816_s3, %s1560_s20  ;;  %s1674_s12 = scalar_lea.hbm %s1820_s7, %s1560_s20 }
  0xdd   : > { %s1858_s13 = scalar_lea.vmem [#allocation8], %s1531_s27  ;;  %v480_v43 = vmul.f32 %v479_v40, %v1582_v29  ;;  %486 = vst [vmem:[%s429_s26] sm:$0xff] %v485_v41  ;;  %v490_v44 = vmul.f32 %v489_v42, %v1582_v29  ;;  %s1689_s11 = scalar_lea.hbm %s1818_s5, %s1560_s20 }
  0xde   : > { %474 = vst [vmem:[%s1858_s13] sm:$0xff] %v473_v39  ;;  %s497_s22 = scalar_lea.sflag [#allocation4], %s1528_s18  ;;  %s1137_s15 = scalar_lea.vmem %s1568_s24, 128 }
  0xdf   : > { %p1138_p8 = scmp.ne.s32.totalorder %s1568_s24, %s1137_s15  ;;  %s1310_s1 = smov [#allocation8]  }
  0xe0   : > { %s1141_s23 = sshll.u32 %s1310_s1, 4  ;;  %s1142_s23 = int_to_ptr.vmem [resolvable:$false] %s1141_s23 }
  0xe1   : > { %p1139_p12 = pnand %p1138_p8, %p1857_p4  ;;  %s1143_s13 = scalar_lea.vmem %s1142_s23, 256 }
  0xe2   : > { %p1144_p0 = scmp.lt.s32.totalorder %s1568_s24, %s1142_s23  ;;  %p1145_p2 = scmp.lt.s32.totalorder %s1143_s13, %s1137_s15 }
  0xe3   : > { %p1140_p10 = pneg %p1139_p12 }
  0xe4   : > { %p1146_p7 = por %p1145_p2, %p1144_p0 }
  0xe6   : > { %p1147_p1 = pnand %p1146_p7, %p1140_p10 }
  0xe8   : > { %1150 = shalt.err (!%p1147_p1)
}
  0xe9   : > { %s1151_s26 = scalar_lea.hbm %s1665_s14, 128  ;;  %s1155_s1 = scalar_lea.hbm %s1816_s3, 512 }
  0xea   : > { %p1152_p9 = scmp.ne.s32.totalorder %s1665_s14, %s1151_s26  ;;  %p1156_p6 = scmp.lt.u32.totalorder %s1665_s14, %s1816_s3 }
  0xeb   : > { %p1157_p11 = scmp.lt.u32.totalorder %s1155_s1, %s1151_s26  ;;  %p1159_p8 = scmp.lt.u32.totalorder %s1151_s26, %s1665_s14 }
  0xec   : > { %p1153_p5 = pnand %p1152_p9, %p1857_p4 }
  0xed   : > { %p1158_p3 = por %p1157_p11, %p1156_p6 }
  0xee   : > { %p1154_p13 = pneg %p1153_p5 }
  0xef   : > { %p1160_p12 = por %p1159_p8, %p1158_p3 }
  0xf1   : > { %p1161_p10 = pnand %p1160_p12, %p1154_p13 }
  0xf3   : > { %1164 = shalt.err (!%p1161_p10)
}
  0xf4   : > { %906 = dma.vmem_to_hbm [thread:$0]  (%p1857_p4), %s1568_s24, 128, %s1665_s14, %s497_s22   ;;  %v491_v45 = vmul.f32 %v490_v44, %v1582_v29  ;;  %v493_v46 = vmul.f32 %v492_v38, %v480_v43 }
  0xf5   : > { %s1859_s15 = scalar_lea.vmem [#allocation11], %s1531_s27  ;;  %s1165_s29 = scalar_lea.vmem %s1668_s25, 128 }
  0xf6   : > { %481 = vst [vmem:[%s1859_s15] sm:$0xff] %v480_v43  ;;  %p1166_p0 = scmp.ne.s32.totalorder %s1668_s25, %s1165_s29  ;;  %s1311_s13 = smov [#allocation14]  }
  0xf7   : > { %s1169_s26 = sshll.u32 %s1311_s13, 4  ;;  %s1170_s26 = int_to_ptr.vmem [resolvable:$false] %s1169_s26 }
  0xf8   : > { %p1167_p2 = pnand %p1166_p0, %p1857_p4  ;;  %s1171_s9 = scalar_lea.vmem %s1170_s26, 256 }
  0xf9   : > { %p1172_p1 = scmp.lt.s32.totalorder %s1668_s25, %s1170_s26  ;;  %p1173_p9 = scmp.lt.s32.totalorder %s1171_s9, %s1165_s29 }
  0xfa   : > { %p1168_p7 = pneg %p1167_p2 }
  0xfb   : > { %p1174_p5 = por %p1173_p9, %p1172_p1 }
  0xfd   : > { %p1175_p13 = pnand %p1174_p5, %p1168_p7 }
  0xff   : > { %1178 = shalt.err (!%p1175_p13)
}
 0x100   : > { %s1179_s24 = scalar_lea.hbm %s1674_s12, 128  ;;  %s1183_s17 = scalar_lea.hbm %s1820_s7, 512 }
 0x101   : > { %p1180_p6 = scmp.ne.s32.totalorder %s1674_s12, %s1179_s24  ;;  %p1184_p8 = scmp.lt.u32.totalorder %s1674_s12, %s1820_s7 }
 0x102   : > { %p1185_p12 = scmp.lt.u32.totalorder %s1183_s17, %s1179_s24  ;;  %p1187_p0 = scmp.lt.u32.totalorder %s1179_s24, %s1674_s12 }
 0x103   : > { %p1181_p11 = pnand %p1180_p6, %p1857_p4 }
 0x104   : > { %p1186_p10 = por %p1185_p12, %p1184_p8 }
 0x105   : > { %p1182_p3 = pneg %p1181_p11 }
 0x106   : > { %p1188_p2 = por %p1187_p0, %p1186_p10 }
 0x108   : > { %p1189_p7 = pnand %p1188_p2, %p1182_p3 }
 0x10a   : > { %1192 = shalt.err (!%p1189_p7)
}
 0x10b   : > { %s1860_s15 = scalar_lea.sflag [#allocation13], %s1540_s21  ;;  %s1193_s29 = scalar_lea.vmem %s1570_s19, 128 }
 0x10c   : > { %910 = dma.vmem_to_hbm [thread:$0]  (%p1857_p4), %s1668_s25, 128, %s1674_s12, %s1860_s15  }
 0x10d   : > { %p1194_p1 = scmp.ne.s32.totalorder %s1570_s19, %s1193_s29  ;;  %s1312_s13 = smov [#allocation11]  }
 0x10e   : > { %s1197_s26 = sshll.u32 %s1312_s13, 4  ;;  %s1198_s26 = int_to_ptr.vmem [resolvable:$false] %s1197_s26 }
 0x10f   : > { %p1195_p9 = pnand %p1194_p1, %p1857_p4  ;;  %s1199_s9 = scalar_lea.vmem %s1198_s26, 256 }
 0x110   : > { %p1200_p13 = scmp.lt.s32.totalorder %s1570_s19, %s1198_s26  ;;  %p1201_p6 = scmp.lt.s32.totalorder %s1199_s9, %s1193_s29 }
 0x111   : > { %p1196_p5 = pneg %p1195_p9 }
 0x112   : > { %p1202_p11 = por %p1201_p6, %p1200_p13 }
 0x114   : > { %p1203_p3 = pnand %p1202_p11, %p1196_p5 }
 0x116   : > { %1206 = shalt.err (!%p1203_p3)
}
 0x117   : > { %s1207_s25 = scalar_lea.hbm %s1689_s11, 128  ;;  %s1211_s14 = scalar_lea.hbm %s1818_s5, 512 }
 0x118   : > { %p1208_p8 = scmp.ne.s32.totalorder %s1689_s11, %s1207_s25  ;;  %p1212_p0 = scmp.lt.u32.totalorder %s1689_s11, %s1818_s5 }
 0x119   : > { %p1213_p2 = scmp.lt.u32.totalorder %s1211_s14, %s1207_s25  ;;  %p1215_p1 = scmp.lt.u32.totalorder %s1207_s25, %s1689_s11 }
 0x11a   : > { %p1209_p12 = pnand %p1208_p8, %p1857_p4 }
 0x11b   : > { %p1214_p7 = por %p1213_p2, %p1212_p0 }
 0x11c   : > { %p1210_p10 = pneg %p1209_p12 }
 0x11d   : > { %p1216_p9 = por %p1215_p1, %p1214_p7 }
 0x11f   : > { %p1217_p5 = pnand %p1216_p9, %p1210_p10 }
 0x121   : > { %1220 = shalt.err (!%p1217_p5)
}
 0x122   : > { %s1861_s1 = scalar_lea.sflag [#allocation10], %s1540_s21  ;;  %v494_v47 = vadd.f32 %v493_v46, %v491_v45  ;;  %s1768_s29 = scalar_lea.hbm %s1821_s8, %s1560_s20 }
 0x123   : > { %908 = dma.vmem_to_hbm [thread:$0]  (%p1857_p4), %s1570_s19, 128, %s1689_s11, %s1861_s1  }
 0x124   : > { %s1862_s13 = scalar_lea.vmem [#allocation15], %s1531_s27  ;;  %s522_s26 = scalar_lea.sflag [#allocation16], %s1528_s18 }
 0x125   : > { %495 = vst [vmem:[%s1862_s13] sm:$0xff] %v494_v47  ;;  %s1221_s21 = scalar_lea.vmem %s1683_s10, 128  ;;  %s1313_s9 = smov [#allocation15]  }
 0x126   : > { %p1222_p13 = scmp.ne.s32.totalorder %s1683_s10, %s1221_s21  ;;  %s1225_s25 = sshll.u32 %s1313_s9, 4  ;;  %s1226_s25 = int_to_ptr.vmem [resolvable:$false] %s1225_s25 }
 0x127   : > { %s1227_s12 = scalar_lea.vmem %s1226_s25, 256  ;;  %p1228_p3 = scmp.lt.s32.totalorder %s1683_s10, %s1226_s25 }
 0x128   : > { %p1223_p6 = pnand %p1222_p13, %p1857_p4  ;;  %p1229_p8 = scmp.lt.s32.totalorder %s1227_s12, %s1221_s21 }
 0x12a   : > { %p1224_p11 = pneg %p1223_p6  ;;  %p1230_p12 = por %p1229_p8, %p1228_p3 }
 0x12c   : > { %p1231_p10 = pnand %p1230_p12, %p1224_p11 }
 0x12e   : > { %1234 = shalt.err (!%p1231_p10)
}
 0x12f   : > { %s1235_s18 = scalar_lea.hbm %s1768_s29, 128  ;;  %s1239_s20 = scalar_lea.hbm %s1821_s8, 512 }
 0x130   : > { %p1236_p0 = scmp.ne.s32.totalorder %s1768_s29, %s1235_s18  ;;  %p1240_p1 = scmp.lt.u32.totalorder %s1768_s29, %s1821_s8 }
 0x131   : > { %p1241_p9 = scmp.lt.u32.totalorder %s1239_s20, %s1235_s18  ;;  %p1243_p13 = scmp.lt.u32.totalorder %s1235_s18, %s1768_s29 }
 0x132   : > { %p1237_p2 = pnand %p1236_p0, %p1857_p4 }
 0x133   : > { %p1242_p5 = por %p1241_p9, %p1240_p1 }
 0x134   : > { %p1238_p7 = pneg %p1237_p2 }
 0x135   : > { %p1244_p6 = por %p1243_p13, %p1242_p5 }
 0x137   : > { %p1245_p11 = pnand %p1244_p6, %p1238_p7 }
 0x139   : > { %1248 = shalt.err (!%p1245_p11)
}
 0x13a   : > { %911 = dma.vmem_to_hbm [thread:$0]  (%p1857_p4), %s1683_s10, 128, %s1768_s29, %s522_s26  }
 0x13b PF: > { %s1863_s14 = sld [smem:[#allocation23_spill]]  ;;  %s1864_s22 = sld [smem:[#allocation27_spill]] }
 0x13c   : > { %p948_p3 = scmp.ge.s32.totalorder %s1303_s30, 2 }
 0x141   : > { %s612_s17 = sand.u32 1, %s1863_s14   ;;  %p1865_p8 = scmp.ne.s32.totalorder %s1864_s22, 0 }
 0x142   : > { %s613_s1 = scalar_lea.sflag [#allocation4], %s612_s17 }
 0x143   : > { %p929_p12 = pnand %p948_p3, %p1865_p8 }
 0x145   : > { %1274 = dma.done.wait (!%p929_p12), %s613_s1, 128  }
 0x146   : > { %1276 = vsyncadd (!%p929_p12), %s613_s1, 4294967168  ;;  %s1866_s23 = sadd.s32 4294967294, %s1303_s30  }
 0x147   : > { %s621_s15 = sand.u32 1, %s1866_s23  }
 0x148   : > { %s622_s13 = scalar_lea.sflag [#allocation10], %s621_s15 }
 0x149   : > { %1278 = dma.done.wait (!%p929_p12), %s622_s13, 256  }
 0x14a   : > { %1280 = vsyncadd (!%p929_p12), %s622_s13, 4294967040  ;;  %s640_s16 = scalar_lea.sflag [#allocation13], %s621_s15 }
 0x14b   : > { %1282 = dma.done.wait (!%p929_p12), %s640_s16, 256  }
 0x14c   : > { %1284 = vsyncadd (!%p929_p12), %s640_s16, 4294967040  ;;  %s658_s10 = scalar_lea.sflag [#allocation16], %s612_s17 }
 0x14d   : > { %1286 = dma.done.wait (!%p929_p12), %s658_s10, 128  }
 0x14e   : > { %1288 = vsyncadd (!%p929_p12), %s658_s10, 4294967168  ;;  %s1867_s30 = sld [smem:[#allocation25_spill]]  ;;  %s1868_s29 = sld [smem:[#allocation24_spill]] }
 0x14f   : > { %s1869_s26 = sld [smem:[#allocation26_spill]]  ;;  %s1870_s27 = smov %s1295_s28 }
 0x154   : > { %p34_p4 = scmp.ge.s32.totalorder %s1867_s30, 6   ;;  %s1871_s28 = smov %s1868_s29 }
 0x155   : > { %s1872_s29 = smov %s1869_s26 }
 0x156   :  { %36 = sbr.rel (!%p34_p4) target bundleno = 15 (0xf), region = 182 }
 0x15d   :  { %663 = vsyncpa [#allocation3], 1 }
 0x15e   :  { %665 = vsyncpa [#allocation3 + $0x1], 1 }
 0x15f   :  { %666 = vsyncpa [#allocation6], 1 }
 0x160   :  { %668 = vsyncpa [#allocation6 + $0x1], 1 }
 0x161   :  { %669 = vsyncpa [#allocation4], 1 }
 0x162   :  { %671 = vsyncpa [#allocation4 + $0x1], 1 }
 0x163   :  { %672 = vsyncpa [#allocation10], 1 }
 0x164   :  { %674 = vsyncpa [#allocation10 + $0x1], 1 }
 0x165   :  { %675 = vsyncpa [#allocation13], 1 }
 0x166   :  { %677 = vsyncpa [#allocation13 + $0x1], 1 }
 0x167   :  { %678 = vsyncpa [#allocation16], 1 }
 0x168   :  { %680 = vsyncpa [#allocation16 + $0x1], 1 }

</bundles_post_ra>
